<compile_context>
chip_gen: v7x
topology: tpu7x:2x2x1
jax: 0.10.0
libtpu: 0.0.40
codegen_flags: <defaults>
</compile_context>

<pallas_src>
import math

import jax
import jax.numpy as jnp
from jax import lax
from jax.experimental import pallas as pl
from jax.experimental.pallas import tpu as pltpu


def _make_arc_margin_kernel(s, m, easy_margin):
    cos_m = math.cos(m)
    sin_m = math.sin(m)
    th = math.cos(math.pi - m)
    mm = math.sin(math.pi - m) * m

    def kernel(x_ref, w_ref, invw_ref, label_ref, o_ref):
        tn = o_ref.shape[1]

        # cosine = (x_norm @ W_tile^T) * inv_w.  x is pre-normalized in the
        # wrapper; W row inverse-norms are folded into the matmul output.
        # Both operands contract on their last (lane) dim -> no W transpose.
        raw = lax.dot_general(
            x_ref[...], w_ref[...],
            dimension_numbers=(((1,), (1,)), ((), ())),
            preferred_element_type=jnp.float32)            # (B, TN) f32
        cosine = raw * invw_ref[...]                        # (B, TN) * (1, TN)

        # Label-column mask: compare the iota against the tile-local label
        # (saves a per-element add vs. offsetting the iota by the tile origin).
        lbl_local = label_ref[...] - pl.program_id(0) * tn  # (B, 1) int32
        col_ids = lax.broadcasted_iota(jnp.int32, cosine.shape, 1)
        mask = col_ids == lbl_local                         # (B, TN)

        # Margin math only for the label column: masked lane-reduce (XLU) to a
        # (B, 1) vector, cheap phi on it, then a single blend over the tile.
        cos_lbl = jnp.sum(jnp.where(mask, cosine, 0.0), axis=-1, keepdims=True)
        sine = jnp.sqrt(jnp.maximum(1.0 - cos_lbl * cos_lbl, 0.0))
        phi = cos_lbl * cos_m - sine * sin_m
        if easy_margin:
            phi = jnp.where(cos_lbl > 0.0, phi, cos_lbl)
        else:
            phi = jnp.where(cos_lbl > th, phi, cos_lbl - mm)

        o_ref[...] = (jnp.where(mask, phi, cosine) * s).astype(o_ref.dtype)

    return kernel


def arc_margin_product(x, weight, label, *, s=30.0, m=0.5, easy_margin=False,
                       block_n=None, compute_dtype=jnp.bfloat16,
                       out_dtype=jnp.float32):
    """x: (B, D); weight: (N, D); label: (B,) int -> (B, N) out_dtype."""
    B, D = x.shape
    N, D2 = weight.shape
    assert D == D2
    eps = 1e-12  # F.normalize default eps

    # ---- wrapper-side prep (O(B*D) + at most one pass over W for the cast) --
    # x normalization + cast hoisted out of the per-tile kernel body.
    x32 = x.astype(jnp.float32)
    x_norm = x32 / jnp.maximum(
        jnp.linalg.norm(x32, axis=-1, keepdims=True), eps)
    x_in = x_norm.astype(compute_dtype)

    # W row inverse-norms from f32 weights (matches the reference), streamed
    # into the kernel as a (1, n_pad) f32 vector.  W itself is only cast, so
    # the bf16 path reads/writes W exactly once and the f32 path is a no-op.
    w32 = weight.astype(jnp.float32)
    inv_w = 1.0 / jnp.maximum(jnp.sqrt(jnp.sum(w32 * w32, axis=-1)), eps)
    w_in = weight.astype(compute_dtype)

    # ---- class-tile size: B- and VMEM-capacity-aware ------------------------
    w_itemsize = jnp.dtype(compute_dtype).itemsize
    out_itemsize = jnp.dtype(out_dtype).itemsize
    try:
        vmem_cap = int(pltpu.get_tpu_info().vmem_capacity_bytes)
    except Exception:
        vmem_cap = 64 << 20  # conservative (v7x per-TC)

    if block_n is None:
        budget = int(vmem_cap * 0.55)
        budget -= 2 * B * D * max(w_itemsize, 4)        # resident x (+ slack)
        # Per class column: W double-buffer + output double-buffer + inv_w
        # double-buffer + ~3 (B, tn) f32 elementwise temporaries.
        per_col = (2 * D * w_itemsize + 2 * B * out_itemsize
                   + 2 * 4 + 3 * B * 4)
        tn = max(budget, 0) // max(per_col, 1)
        tn = min(tn, 8192)
        # Keep >= ~8 parallel grid steps so v7x's two TensorCores stay
        # balanced and the W prefetch pipeline has depth.
        tn = min(tn, pl.cdiv(pl.cdiv(N, 8), 128) * 128)
    else:
        tn = block_n
    tn = max(128, (tn // 128) * 128)                    # lane-dense tiles
    tn = min(tn, pl.cdiv(N, 128) * 128)

    n_pad = pl.cdiv(N, tn) * tn
    if n_pad != N:
        w_in = jnp.pad(w_in, ((0, n_pad - N), (0, 0)))          # zero rows
        inv_w = jnp.pad(inv_w, (0, n_pad - N), constant_values=1.0)

    invw_2d = inv_w.reshape(1, n_pad).astype(jnp.float32)
    label2d = label.astype(jnp.int32).reshape(B, 1)

    kernel = _make_arc_margin_kernel(s, m, easy_margin)

    out = pl.pallas_call(
        kernel,
        out_shape=jax.ShapeDtypeStruct((B, n_pad), out_dtype),
        grid=(n_pad // tn,),
        in_specs=[
            pl.BlockSpec((B, D), lambda j: (0, 0)),      # x: resident
            pl.BlockSpec((tn, D), lambda j: (j, 0)),     # W: streamed over N
            pl.BlockSpec((1, tn), lambda j: (0, j)),     # inv_w: streamed
            pl.BlockSpec((B, 1), lambda j: (0, 0)),      # label: resident
        ],
        out_specs=pl.BlockSpec((B, tn), lambda j: (0, j)),
        compiler_params=pltpu.CompilerParams(
            dimension_semantics=("parallel",),           # megacore-split over N
            vmem_limit_bytes=int(vmem_cap * 0.75)),
    )(x_in, w_in, invw_2d, label2d)

    return out[:, :N]


def reference_arc_margin(x, weight, label, *, s=30.0, m=0.5, easy_margin=False):
    """Pure-JAX reference mirroring the PyTorch forward."""
    eps = 1e-12
    xn = x / jnp.maximum(jnp.linalg.norm(x, axis=-1, keepdims=True), eps)
    wn = weight / jnp.maximum(jnp.linalg.norm(weight, axis=-1, keepdims=True), eps)
    cosine = xn @ wn.T
    sine = jnp.sqrt(jnp.clip(1.0 - cosine ** 2, 0.0, 1.0))
    cos_m, sin_m = math.cos(m), math.sin(m)
    th = math.cos(math.pi - m)
    mm = math.sin(math.pi - m) * m
    phi = cosine * cos_m - sine * sin_m
    if easy_margin:
        phi = jnp.where(cosine > 0.0, phi, cosine)
    else:
        phi = jnp.where(cosine > th, phi, cosine - mm)
    one_hot = jax.nn.one_hot(label, cosine.shape[1], dtype=jnp.float32)
    return (one_hot * phi + (1.0 - one_hot) * cosine) * s


if __name__ == "__main__":
    B, in_features, out_features = 8, 32, 128
    s_param, m_param = 30.0, 0.5

    key = jax.random.PRNGKey(0)
    kx, kw, kl = jax.random.split(key, 3)

    x = jax.random.normal(kx, (B, in_features), dtype=jnp.float32)

    # xavier_uniform_ for weight (out_features, in_features)
    bound = math.sqrt(6.0 / (in_features + out_features))
    weight = jax.random.uniform(
        kw, (out_features, in_features), minval=-bound, maxval=bound,
        dtype=jnp.float32)
    label = jax.random.randint(kl, (B,), 0, out_features, dtype=jnp.int32)

    # f32 validation path: matches the reference tightly.
    out = jax.block_until_ready(
        arc_margin_product(x, weight, label, s=s_param, m=m_param,
                           compute_dtype=jnp.float32))
    ref = reference_arc_margin(x, weight, label, s=s_param, m=m_param)
    assert out.shape == (B, out_features)
    assert jnp.allclose(out, ref, atol=1e-4, rtol=1e-4), (
        float(jnp.max(jnp.abs(out - ref))))

    # easy_margin branch.
    out_em = jax.block_until_ready(
        arc_margin_product(x, weight, label, s=s_param, m=m_param,
                           easy_margin=True, compute_dtype=jnp.float32))
    ref_em = reference_arc_margin(x, weight, label, s=s_param, m=m_param,
                                  easy_margin=True)
    assert jnp.allclose(out_em, ref_em, atol=1e-4, rtol=1e-4), (
        float(jnp.max(jnp.abs(out_em - ref_em))))

    # N not a multiple of the tile: exercises padding + tile-local label mask.
    N2 = 200
    w2 = jax.random.uniform(kw, (N2, in_features), minval=-bound, maxval=bound,
                            dtype=jnp.float32)
    lbl2 = jax.random.randint(kl, (B,), 0, N2, dtype=jnp.int32)
    out2 = jax.block_until_ready(
        arc_margin_product(x, w2, lbl2, s=s_param, m=m_param, block_n=128,
                           compute_dtype=jnp.float32))
    ref2 = reference_arc_margin(x, w2, lbl2, s=s_param, m=m_param)
    assert out2.shape == (B, N2)
    assert jnp.allclose(out2, ref2, atol=1e-4, rtol=1e-4), (
        float(jnp.max(jnp.abs(out2 - ref2))))

    # Default (bf16 W/x streaming, f32 accumulate) path: looser tolerance.
    out_bf16 = jax.block_until_ready(
        arc_margin_product(x, weight, label, s=s_param, m=m_param))
    assert out_bf16.shape == (B, out_features)
    assert bool(jnp.all(jnp.isfinite(out_bf16)))
    assert float(jnp.max(jnp.abs(out_bf16 - ref))) < 0.5

    print("KERNEL_OK")
</pallas_src>

<mosaic_0001>
module attributes {stable_mosaic.version = 11 : i64} {
  func.func @kernel(%arg0: i32, %arg1: memref<8x32xf32, #tpu.memory_space<vmem>>, %arg2: memref<128x32xf32, #tpu.memory_space<vmem>>, %arg3: memref<1x128xf32, #tpu.memory_space<vmem>>, %arg4: memref<8x1xi32, #tpu.memory_space<vmem>>, %arg5: memref<8x128xf32, #tpu.memory_space<vmem>>) attributes {dimension_semantics = [#tpu.dimension_semantics<parallel>], iteration_bounds = array<i64: 1>, scalar_prefetch = 0 : i64, scratch_operands = 0 : i64, tpu.core_type = #tpu.core_type<tc>, window_params = [{pipeline_mode = #tpu.pipeline_mode<synchronous>, transform_indices = @transform_0, window_bounds = array<i64: 8, 32>}, {transform_indices = @transform_1, window_bounds = array<i64: 128, 32>}, {transform_indices = @transform_2, window_bounds = array<i64: 1, 128>}, {pipeline_mode = #tpu.pipeline_mode<synchronous>, transform_indices = @transform_3, window_bounds = array<i64: 8, 1>}, {transform_indices = @transform_4, window_bounds = array<i64: 8, 128>}]} {
    %c0 = arith.constant 0 : index
    %c0_0 = arith.constant 0 : index
    %0 = vector.load %arg1[%c0, %c0_0] : memref<8x32xf32, #tpu.memory_space<vmem>>, vector<8x32xf32>
    %c0_1 = arith.constant 0 : index
    %c0_2 = arith.constant 0 : index
    %1 = vector.load %arg2[%c0_1, %c0_2] : memref<128x32xf32, #tpu.memory_space<vmem>>, vector<128x32xf32>
    %cst = arith.constant dense<0.000000e+00> : vector<8x128xf32>
    %2 = tpu.matmul %0, %1, %cst {dimension_numbers = #tpu.dot_dimension_numbers<[1], [1], [0], [0], [0, 0, 1, 0], [], []>} : vector<8x32xf32>, vector<128x32xf32>, vector<8x128xf32> -> vector<8x128xf32>
    %c0_3 = arith.constant 0 : index
    %c0_4 = arith.constant 0 : index
    %3 = vector.load %arg3[%c0_3, %c0_4] : memref<1x128xf32, #tpu.memory_space<vmem>>, vector<1x128xf32>
    %4 = vector.broadcast %3 : vector<1x128xf32> to vector<8x128xf32>
    %5 = arith.mulf %2, %4 : vector<8x128xf32>
    %c0_5 = arith.constant 0 : index
    %c0_6 = arith.constant 0 : index
    %6 = vector.load %arg4[%c0_5, %c0_6] : memref<8x1xi32, #tpu.memory_space<vmem>>, vector<8x1xi32>
    %c128_i32 = arith.constant 128 : i32
    %7 = arith.muli %arg0, %c128_i32 : i32
    %8 = vector.broadcast %7 : i32 to vector<8x1xi32>
    %9 = arith.subi %6, %8 : vector<8x1xi32>
    %10 = tpu.iota {dimensions = array<i32: 1>} : vector<8x128xi32>
    %11 = vector.broadcast %9 : vector<8x1xi32> to vector<8x128xi32>
    %12 = arith.cmpi eq, %10, %11 : vector<8x128xi32>
    %cst_7 = arith.constant 0.000000e+00 : f32
    %13 = vector.broadcast %cst_7 : f32 to vector<8x128xf32>
    %14 = arith.select %12, %5, %13 : vector<8x128xi1>, vector<8x128xf32>
    %cst_8 = arith.constant dense<0.000000e+00> : vector<8xf32>
    %15 = vector.multi_reduction <add>, %14, %cst_8 [1] : vector<8x128xf32> to vector<8xf32>
    %16 = vector.shape_cast %15 : vector<8xf32> to vector<8x1xf32>
    %17 = arith.mulf %16, %16 : vector<8x1xf32>
    %cst_9 = arith.constant 1.000000e+00 : f32
    %18 = vector.broadcast %cst_9 : f32 to vector<8x1xf32>
    %19 = arith.subf %18, %17 : vector<8x1xf32>
    %cst_10 = arith.constant 0.000000e+00 : f32
    %20 = vector.broadcast %cst_10 : f32 to vector<8x1xf32>
    %21 = arith.maximumf %19, %20 : vector<8x1xf32>
    %22 = math.sqrt %21 : vector<8x1xf32>
    %cst_11 = arith.constant 0.87758255 : f32
    %23 = vector.broadcast %cst_11 : f32 to vector<8x1xf32>
    %24 = arith.mulf %16, %23 : vector<8x1xf32>
    %cst_12 = arith.constant 0.47942555 : f32
    %25 = vector.broadcast %cst_12 : f32 to vector<8x1xf32>
    %26 = arith.mulf %22, %25 : vector<8x1xf32>
    %27 = arith.subf %24, %26 : vector<8x1xf32>
    %cst_13 = arith.constant -0.87758255 : f32
    %28 = vector.broadcast %cst_13 : f32 to vector<8x1xf32>
    %29 = arith.cmpf ogt, %16, %28 : vector<8x1xf32>
    %cst_14 = arith.constant 0.239712775 : f32
    %30 = vector.broadcast %cst_14 : f32 to vector<8x1xf32>
    %31 = arith.subf %16, %30 : vector<8x1xf32>
    %32 = arith.select %29, %27, %31 : vector<8x1xi1>, vector<8x1xf32>
    %33 = vector.shape_cast %32 : vector<8x1xf32> to vector<8x1xf32>
    %34 = vector.broadcast %33 : vector<8x1xf32> to vector<8x128xf32>
    %35 = arith.select %12, %34, %5 : vector<8x128xi1>, vector<8x128xf32>
    %cst_15 = arith.constant 3.000000e+01 : f32
    %36 = vector.broadcast %cst_15 : f32 to vector<8x128xf32>
    %37 = arith.mulf %35, %36 : vector<8x128xf32>
    %c0_16 = arith.constant 0 : index
    %c0_17 = arith.constant 0 : index
    %38 = vector.load %arg5[%c0_16, %c0_17] : memref<8x128xf32, #tpu.memory_space<vmem>>, vector<8x128xf32>
    tpu.vector_store %arg5[%c0_16, %c0_17], %37 {strides = array<i32>} : memref<8x128xf32, #tpu.memory_space<vmem>>, vector<8x128xf32>,
    return
  }
  func.func @transform_0(%arg0: i32) -> (i32, i32) {
    %c0_i32 = arith.constant 0 : i32
    %c0_i32_0 = arith.constant 0 : i32
    %c0_i32_1 = arith.constant 0 : i32
    return %c0_i32, %c0_i32_0 : i32, i32
  }
  func.func @transform_1(%arg0: i32) -> (i32, i32) {
    %c0_i32 = arith.constant 0 : i32
    %c0_i32_0 = arith.constant 0 : i32
    return %arg0, %c0_i32 : i32, i32
  }
  func.func @transform_2(%arg0: i32) -> (i32, i32) {
    %c0_i32 = arith.constant 0 : i32
    %c0_i32_0 = arith.constant 0 : i32
    return %c0_i32, %arg0 : i32, i32
  }
  func.func @transform_3(%arg0: i32) -> (i32, i32) {
    %c0_i32 = arith.constant 0 : i32
    %c0_i32_0 = arith.constant 0 : i32
    %c0_i32_1 = arith.constant 0 : i32
    return %c0_i32, %c0_i32_0 : i32, i32
  }
  func.func @transform_4(%arg0: i32) -> (i32, i32) {
    %c0_i32 = arith.constant 0 : i32
    %c0_i32_0 = arith.constant 0 : i32
    return %c0_i32, %arg0 : i32, i32
  }
}

</mosaic_0001>

<bundles_post_ra>
// kernel: tpu_custom_call.1
= control target key start
LH: loop header
LB: loop body
LE: loop exit
PB: predicated region body
PF: predicated region fallthrough
CT: control target
= control target key end

     0   :  { %vm35_vm0 = vcmask 261120   ;;  %v346_v2 = vmov 0.0|0.0   ;;  %vm347_vm2 = vmmov 0   ;;  %v348_v5 = vmov 0.0   ;;  %s470_s0 = inlined_call_operand.vmem [shape: f32[8,32], index: 0, kind: input, shape index: {}]   ;;  %s471_s1 = inlined_call_operand.vmem [shape: f32[128,32], index: 1, kind: input, shape index: {}]   ;;  %s472_s2 = inlined_call_operand.vmem [shape: f32[1,128], index: 2, kind: input, shape index: {}]   ;;  %s473_s3 = inlined_call_operand.vmem [shape: s32[8,1], index: 3, kind: input, shape index: {}]   ;;  %s474_s4 = inlined_call_operand.hbm [shape: f32[8,128], index: 4, kind: output, shape index: {}]  }
   0x1   :  { %v19_v0 = vld [vmem:[%s471_s1] sm:$0xff]  ;;  %v20_v1 = vld [vmem:[%s471_s1 + $0x8] sm:$0xff]  ;;  %282 = vmatprep.subr.bf16.mxu0 %v346_v2  ;;  %vm384_vm1 = vmpackc.low %vm35_vm0, %vm35_vm0  ;;  %279 = vmatprep.mubr.msk.f32.mxu0 %vm347_vm2, %v348_v5  ;;  %v349_v6 = vmov 0  }
   0x2   :  { %v283_v3 = vpack.c.bf16 %v20_v1, %v19_v0  ;;  %319 = vset.pattern.permute.xlu0 %v349_v6  ;;  %v21_v7 = vld [vmem:[%s471_s1 + $0x10] sm:$0xff]  ;;  %v22_v8 = vld [vmem:[%s471_s1 + $0x18] sm:$0xff]  ;;  %v165_v9 = vld [vmem:[%s473_s3] sm:$0xff] }
   0x4   :  { %285 = vmatpush3.bf16.xpose.msk.msra.mxu0 %vm384_vm1, %v283_v3 }
   0x5   :  { %286 = vmatprep.subr.bf16.mxu0 %v346_v2 }
   0x6   :  { %9 = vsyncpa [#allocation3], 0  ;;  %v287_v10 = vpack.c.bf16 %v22_v8, %v21_v7  ;;  %172 = vperm.xlu0 %319, %v165_v9   ;;  %v23_v11 = vld [vmem:[%s471_s1 + $0x20] sm:$0xff]  ;;  %v24_v12 = vld [vmem:[%s471_s1 + $0x28] sm:$0xff]  ;;  %v169_v30 = vlaneseq }
   0x7   :  { %v291_v13 = vpack.c.bf16 %v24_v12, %v23_v11  ;;  %v25_v14 = vld [vmem:[%s471_s1 + $0x30] sm:$0xff]  ;;  %v26_v15 = vld [vmem:[%s471_s1 + $0x38] sm:$0xff]  ;;  %v27_v17 = vld [vmem:[%s471_s1 + $0x40] sm:$0xff] }
   0x8   :  { %v295_v16 = vpack.c.bf16 %v26_v15, %v25_v14  ;;  %v28_v18 = vld [vmem:[%s471_s1 + $0x48] sm:$0xff]  ;;  %v29_v20 = vld [vmem:[%s471_s1 + $0x50] sm:$0xff]  ;;  %v30_v21 = vld [vmem:[%s471_s1 + $0x58] sm:$0xff]  ;;  %v170_v31 = vand.u32 127, %v169_v30 }
   0x9   :  { %v299_v19 = vpack.c.bf16 %v28_v18, %v27_v17  ;;  %v303_v22 = vpack.c.bf16 %v30_v21, %v29_v20  ;;  %v31_v23 = vld [vmem:[%s471_s1 + $0x60] sm:$0xff]  ;;  %v32_v24 = vld [vmem:[%s471_s1 + $0x68] sm:$0xff]  ;;  %v33_v26 = vld [vmem:[%s471_s1 + $0x70] sm:$0xff] }
   0xa   :  { %v307_v25 = vpack.c.bf16 %v32_v24, %v31_v23  ;;  %v34_v27 = vld [vmem:[%s471_s1 + $0x78] sm:$0xff]  ;;  %v18_v29 = vld [vmem:[%s470_s0] sm:$0xff]  ;;  %s350_s0 = smov [#allocation2]  }
   0xb   :  { %v311_v28 = vpack.c.bf16 %v34_v27, %v33_v26  ;;  %v228_v33 = vld [vmem:[%s472_s2] ss:$0 sm:$0xff]  ;;  %s203_s1 = sshll.u32 %s350_s0, 4  ;;  %s204_s1 = int_to_ptr.vmem [resolvable:$true] %s203_s1 }
   0xc   :  { %289 = vmatpush3.bf16.xpose.msk.msra.mxu0 %vm384_vm1, %v287_v10  ;;  %s322_s2 = scalar_lea.vmem %s204_s1, 128  ;;  %p327_p1 = scmp.lt.s32.totalorder %s204_s1, %s204_s1 }
   0xd   :  { %290 = vmatprep.subr.bf16.mxu0 %v346_v2  ;;  %p323_p0 = scmp.ne.s32.totalorder %s204_s1, %s322_s2  ;;  %p328_p2 = scmp.lt.s32.totalorder %s322_s2, %s322_s2 }
   0xf   :  { %p329_p3 = por %p328_p2, %p327_p1 }
  0x11   :  { %p330_p4 = pnand %p329_p3, %p323_p0 }
  0x14   :  { %293 = vmatpush3.bf16.xpose.msk.msra.mxu0 %vm384_vm1, %v291_v13 }
  0x15   :  { %294 = vmatprep.subr.bf16.mxu0 %v346_v2 }
  0x1c   :  { %297 = vmatpush3.bf16.xpose.msk.msra.mxu0 %vm384_vm1, %v295_v16 }
  0x1d   :  { %298 = vmatprep.subr.bf16.mxu0 %v346_v2 }
  0x24   :  { %301 = vmatpush3.bf16.xpose.msk.msra.mxu0 %vm384_vm1, %v299_v19 }
  0x25   :  { %302 = vmatprep.subr.bf16.mxu0 %v346_v2 }
  0x2c   :  { %305 = vmatpush3.bf16.xpose.msk.msra.mxu0 %vm384_vm1, %v303_v22 }
  0x2d   :  { %306 = vmatprep.subr.bf16.mxu0 %v346_v2 }
  0x34   :  { %309 = vmatpush3.bf16.xpose.msk.msra.mxu0 %vm384_vm1, %v307_v25 }
  0x35   :  { %310 = vmatprep.subr.bf16.mxu0 %v346_v2 }
  0x3c   :  { %313 = vmatpush3.bf16.xpose.msk.msra.mxu0 %vm384_vm1, %v311_v28 }
  0x43   :  { %280 = vmatmul.mubr.msk.f32.vlgmr.msra.gmra.mrb[0].mxu0 %vm35_vm0, %v18_v29 }
  0x85   :  { %v173_v32 = vpop.permute.xlu0 %172 }
  0x86   :  { %vm174_vm3 = vcmp.eq.s32.totalorder %v170_v31, %v173_v32 }
 0x116   :  { %v153_v34 = vpop.f32.mrb[0].mxu0 }
 0x117   :  { %v164_v35 = vmul.f32 %v228_v33, %v153_v34  ;;  %v281_v36 = vpop.f32.mrb[1].mxu0 }
 0x119   :  { %v175_v37 = vsel %vm174_vm3, %v164_v35, 0.0 }
 0x11a   :  { %176 = vadd.xlane.f32.xlu0 %v175_v37 }
 0x1a7   :  { %v177_v38 = vpop.xlane.xlu0 %176 }
 0x1a8   :  { %v178_v39 = vmul.f32 %v177_v38, %v177_v38  ;;  %v188_v47 = vmul.f32 0.87758255, %v177_v38  ;;  %v229_v50 = vadd.f32 -0.23971277, %v177_v38  ;;  %vm191_vm6 = vcmp.gt.f32.partialorder %v177_v38, -0.87758255 }
 0x1aa   :  { %v179_v40 = vsub.f32 1.0, %v178_v39 }
 0x1ac   :  { %v180_v41 = vmax.f32 %v179_v40, 0.0 }
 0x1ae   :  { %320 = vrsqrt.f32 %v180_v41  ;;  %vm183_vm4 = vcmp.eq.f32.partialorder %v180_v41, inf  ;;  %v186_v44 = vand.u32 2147483648, %v180_v41  ;;  %vm185_vm5 = vcmp.eq.f32.partialorder %v180_v41, 0.0 }
 0x1b8   :  { %v321_v42 = vpop.eup %320 }
 0x1b9   :  { %v182_v43 = vmul.f32 %v321_v42, %v180_v41 }
 0x1bb   :  { %v184_v45 = vsel %vm183_vm4, %v180_v41, %v182_v43 }
 0x1bc   :  { %v187_v46 = vsel %vm185_vm5, %v186_v44, %v184_v45 }
 0x1bd   :  { %v189_v48 = vmul.f32 0.47942555, %v187_v46 }
 0x1bf   :  { %v190_v49 = vsub.f32 %v188_v47, %v189_v48 }
 0x1c1   :  { %v193_v51 = vsel %vm191_vm6, %v190_v49, %v229_v50 }
 0x1c2   :  { %v194_v52 = vsel %vm174_vm3, %v193_v51, %v164_v35 }
 0x1c3   :  { %v195_v53 = vmul.f32 30.0, %v194_v52 }
 0x1c5   :  { %196 = vst [vmem:[#allocation2] sm:$0xff] %v195_v53 }
 0x1c6   :  { %333 = shalt.err (!%p330_p4)
}
 0x1c7   :  { %s334_s28 = scalar_lea.hbm %s474_s4, 128 }
 0x1c8   :  { %p335_p5 = scmp.ne.s32.totalorder %s474_s4, %s334_s28  ;;  %p338_p6 = scmp.lt.u32.totalorder %s334_s28, %s474_s4 }
 0x1ca   :  { %p340_p7 = pnand %p338_p6, %p335_p5 }
 0x1cc   :  { %343 = shalt.err (!%p340_p7)
}
 0x1cd   :  { %206 = dma.vmem_to_hbm [thread:$0]  %s204_s1, 128, %s474_s4, [#allocation3]  }
 0x1ce   :  { %344 = dma.done.wait [#allocation3], 128  }
 0x1cf   :  { %345 = vsyncadd [#allocation3], 4294967168 }
 0x1d0   :  { %210 = vsyncpa [#allocation3], 1 }

</bundles_post_ra>
